<compile_context>
chip_gen: v7x
topology: tpu7x:2x2x1
jax: 0.10.0
libtpu: 0.0.40
codegen_flags: <defaults>
</compile_context>

<pallas_src>
import functools

import jax
import jax.numpy as jnp
from jax.experimental import pallas as pl
from jax.experimental.pallas import tpu as pltpu


def _bbox_head_kernel(x_ref, w_ref, b_ref, o_ref):
    # x_ref: (Cin, tm)   w_ref: (Cout, Cin)   b_ref: (Cout, 1)   o_ref: (Cout, tm)
    acc = jnp.dot(w_ref[...], x_ref[...], preferred_element_type=jnp.float32)
    o_ref[...] = (acc + b_ref[...]).astype(o_ref.dtype)


def _pick_spatial_tile(M, N, cin, cout, itemsize, vmem_budget=24 * 1024 * 1024):
    """Pick the lane-dense spatial tile width (multiple of 128) for the grid."""
    if M <= 128:
        # Full-extent single block is legal even when M is not a multiple of 128.
        return M

    def fits(t):
        # double-buffered input + output tiles, plus resident weight & bias
        return (2 * cin * t + 2 * cout * t + cin * cout + cout) * itemsize <= vmem_budget

    cands = [t for t in (8192, 4096, 2048, 1024, 512, 256, 128) if t <= M and fits(t)]
    if not cands:
        return 128

    # Prefer an exact divisor of M (no ragged boundary block, no wasted work).
    divisors = [t for t in cands if M % t == 0]
    tm = divisors[0] if divisors else cands[0]

    # Keep a reasonably deep grid so megacore sharding + pipelining have work.
    while tm > 128 and N * ((M + tm - 1) // tm) < 8:
        tm //= 2
    return tm


def _bbox_head_matmul(x3d, w, b):
    """x3d: (N, Cin, M), w: (Cout, Cin), b: (Cout,) -> (N, Cout, M)."""
    N, Cin, M = x3d.shape
    Cout = w.shape[0]
    itemsize = jnp.dtype(x3d.dtype).itemsize

    tm = _pick_spatial_tile(M, N, Cin, Cout, itemsize)
    n_tiles = (M + tm - 1) // tm

    b2d = b.reshape(Cout, 1).astype(jnp.float32)

    flops = 2 * N * M * Cin * Cout
    bytes_accessed = (N * M * Cin + N * M * Cout) * itemsize + (Cin * Cout + Cout) * 4

    resident = (2 * Cin * tm + 2 * Cout * tm + Cin * Cout + Cout) * itemsize
    vmem_limit = int(min(48 * 1024 * 1024, max(16 * 1024 * 1024, 2 * resident)))

    out = pl.pallas_call(
        _bbox_head_kernel,
        out_shape=jax.ShapeDtypeStruct((N, Cout, M), x3d.dtype),
        grid_spec=pltpu.PrefetchScalarGridSpec(
            num_scalar_prefetch=0,
            grid=(N, n_tiles),
            in_specs=[
                pl.BlockSpec((None, Cin, tm), lambda n, i: (n, 0, i)),  # activation tile
                pl.BlockSpec((Cout, Cin), lambda n, i: (0, 0)),         # weight (resident)
                pl.BlockSpec((Cout, 1), lambda n, i: (0, 0)),           # bias   (resident)
            ],
            out_specs=pl.BlockSpec((None, Cout, tm), lambda n, i: (n, 0, i)),
        ),
        compiler_params=pltpu.CompilerParams(
            dimension_semantics=("parallel", "parallel"),
            vmem_limit_bytes=vmem_limit,
        ),
        cost_estimate=pl.CostEstimate(
            flops=flops, transcendentals=0, bytes_accessed=bytes_accessed
        ),
    )(x3d, w, b2d)
    return out


@functools.partial(jax.jit, static_argnames=("num_anchors",))
def bbox_head_forward(x_nchw, weight, bias, *, num_anchors):
    N, C, H, W = x_nchw.shape
    M = H * W
    # NCHW-native: only a reshape (free on contiguous NCHW), NO input transpose.
    x3d = x_nchw.reshape(N, C, M)                        # (N, Cin, M)
    out3d = _bbox_head_matmul(x3d, weight, bias)         # (N, Cout, M)
    # Tiny output permute (only Cout = num_anchors*4 channels), then the
    # PyTorch permute(0,2,3,1).view(N, -1, 4) equivalent.
    out = jnp.transpose(out3d, (0, 2, 1))                # (N, M, Cout)
    return out.reshape(N, M * num_anchors, 4)


class BboxHeadPallas:
    """JAX/Pallas equivalent of the PyTorch BboxHead module."""

    def __init__(self, inchannels=512, num_anchors=3, key=jax.random.PRNGKey(0)):
        self.inchannels = inchannels
        self.num_anchors = num_anchors
        cout = num_anchors * 4
        kw, kb = jax.random.split(key)
        fan_in = inchannels  # 1x1 kernel
        bound = 1.0 / (fan_in ** 0.5)
        # Weight stored in PyTorch conv layout (Cout, Cin) == (Cout, Cin, 1, 1) squeezed.
        self.weight = jax.random.uniform(
            kw, (cout, inchannels), jnp.float32, minval=-bound, maxval=bound
        )
        self.bias = jax.random.uniform(
            kb, (cout,), jnp.float32, minval=-bound, maxval=bound
        )

    def __call__(self, x_nchw):
        assert x_nchw.shape[1] == self.inchannels
        return bbox_head_forward(
            x_nchw, self.weight, self.bias, num_anchors=self.num_anchors
        )


def _reference_forward(x_nchw, weight_oc_ic, bias, num_anchors):
    """Pure-JAX reference (same math as the PyTorch module)."""
    N, C, H, W = x_nchw.shape
    out = jnp.einsum("nchw,oc->nhwo", x_nchw, weight_oc_ic) + bias
    return out.reshape(N, H * W * num_anchors, 4)


if __name__ == "__main__":
    key = jax.random.PRNGKey(0)
    k_x, k_p, k_x2 = jax.random.split(key, 3)
    num_anchors = 3

    # Primary small test: batch=2, inchannels=32, 8x8 feature map -> (2, 192, 4).
    N, Cin, H, W = 2, 32, 8, 8
    x = jax.random.normal(k_x, (N, Cin, H, W), jnp.float32)
    head = BboxHeadPallas(inchannels=Cin, num_anchors=num_anchors, key=k_p)
    out = jax.block_until_ready(head(x))
    ref = _reference_forward(x, head.weight, head.bias, num_anchors)
    assert out.shape == (N, H * W * num_anchors, 4), out.shape
    assert jnp.allclose(out, ref, atol=1e-5, rtol=1e-5), "mismatch vs reference (small)"

    # Second test exercising the multi-tile, 128-multiple lane-dense path.
    N2, Cin2, H2, W2 = 1, 64, 16, 32  # M = 512 -> tiled into 128-wide lane tiles
    x2 = jax.random.normal(k_x2, (N2, Cin2, H2, W2), jnp.float32)
    head2 = BboxHeadPallas(inchannels=Cin2, num_anchors=num_anchors, key=k_p)
    out2 = jax.block_until_ready(head2(x2))
    ref2 = _reference_forward(x2, head2.weight, head2.bias, num_anchors)
    assert out2.shape == (N2, H2 * W2 * num_anchors, 4), out2.shape
    assert jnp.allclose(out2, ref2, atol=1e-4, rtol=1e-4), "mismatch vs reference (tiled)"

    # Third test: spatial size NOT a multiple of 128 (ragged boundary block path).
    N3, Cin3, H3, W3 = 2, 32, 10, 20  # M = 200 -> tm = 128, cdiv grid, masked tail
    x3 = jax.random.normal(k_x, (N3, Cin3, H3, W3), jnp.float32)
    head3 = BboxHeadPallas(inchannels=Cin3, num_anchors=num_anchors, key=k_p)
    out3 = jax.block_until_ready(head3(x3))
    ref3 = _reference_forward(x3, head3.weight, head3.bias, num_anchors)
    assert out3.shape == (N3, H3 * W3 * num_anchors, 4), out3.shape
    assert jnp.allclose(out3, ref3, atol=1e-4, rtol=1e-4), "mismatch vs reference (ragged)"

    print("KERNEL_OK")
</pallas_src>

<mosaic_0001>
module attributes {stable_mosaic.version = 11 : i64} {
  func.func @_bbox_head_kernel(%arg0: i32, %arg1: i32, %arg2: memref<1x32x64xf32, #tpu.memory_space<vmem>>, %arg3: memref<12x32xf32, #tpu.memory_space<vmem>>, %arg4: memref<12x1xf32, #tpu.memory_space<vmem>>, %arg5: memref<1x12x64xf32, #tpu.memory_space<vmem>>) attributes {dimension_semantics = [#tpu.dimension_semantics<parallel>, #tpu.dimension_semantics<parallel>], iteration_bounds = array<i64: 2, 1>, scalar_prefetch = 0 : i64, scratch_operands = 0 : i64, tpu.core_type = #tpu.core_type<tc>, window_params = [{transform_indices = @transform_0, window_bounds = array<i64: 1, 32, 64>}, {pipeline_mode = #tpu.pipeline_mode<synchronous>, transform_indices = @transform_1, window_bounds = array<i64: 12, 32>}, {pipeline_mode = #tpu.pipeline_mode<synchronous>, transform_indices = @transform_2, window_bounds = array<i64: 12, 1>}, {transform_indices = @transform_3, window_bounds = array<i64: 1, 12, 64>}]} {
    %c0 = arith.constant 0 : index
    %c0_0 = arith.constant 0 : index
    %0 = vector.load %arg3[%c0, %c0_0] : memref<12x32xf32, #tpu.memory_space<vmem>>, vector<12x32xf32>
    %c0_1 = arith.constant 0 : index
    %c0_2 = arith.constant 0 : index
    %c0_3 = arith.constant 0 : index
    %1 = vector.load %arg2[%c0_1, %c0_2, %c0_3] : memref<1x32x64xf32, #tpu.memory_space<vmem>>, vector<1x32x64xf32>
    %2 = vector.shape_cast %1 : vector<1x32x64xf32> to vector<32x64xf32>
    %cst = arith.constant dense<0.000000e+00> : vector<12x64xf32>
    %3 = tpu.matmul %0, %2, %cst {dimension_numbers = #tpu.dot_dimension_numbers<[1], [0], [0], [1], [0, 0, 1, 1], [], []>} : vector<12x32xf32>, vector<32x64xf32>, vector<12x64xf32> -> vector<12x64xf32>
    %c0_4 = arith.constant 0 : index
    %c0_5 = arith.constant 0 : index
    %4 = vector.load %arg4[%c0_4, %c0_5] : memref<12x1xf32, #tpu.memory_space<vmem>>, vector<12x1xf32>
    %5 = vector.broadcast %4 : vector<12x1xf32> to vector<12x64xf32>
    %6 = arith.addf %3, %5 : vector<12x64xf32>
    %c0_6 = arith.constant 0 : index
    %c0_7 = arith.constant 0 : index
    %c0_8 = arith.constant 0 : index
    %7 = vector.load %arg5[%c0_6, %c0_7, %c0_8] : memref<1x12x64xf32, #tpu.memory_space<vmem>>, vector<1x12x64xf32>
    %8 = vector.shape_cast %7 : vector<1x12x64xf32> to vector<12x64xf32>
    %9 = vector.shape_cast %6 : vector<12x64xf32> to vector<1x12x64xf32>
    tpu.vector_store %arg5[%c0_6, %c0_7, %c0_8], %9 {strides = array<i32>} : memref<1x12x64xf32, #tpu.memory_space<vmem>>, vector<1x12x64xf32>,
    return
  }
  func.func @transform_0(%arg0: i32, %arg1: i32) -> (i32, i32, i32) {
    %c0_i32 = arith.constant 0 : i32
    %c0_i32_0 = arith.constant 0 : i32
    return %arg0, %c0_i32, %arg1 : i32, i32, i32
  }
  func.func @transform_1(%arg0: i32, %arg1: i32) -> (i32, i32) {
    %c0_i32 = arith.constant 0 : i32
    %c0_i32_0 = arith.constant 0 : i32
    %c0_i32_1 = arith.constant 0 : i32
    return %c0_i32, %c0_i32_0 : i32, i32
  }
  func.func @transform_2(%arg0: i32, %arg1: i32) -> (i32, i32) {
    %c0_i32 = arith.constant 0 : i32
    %c0_i32_0 = arith.constant 0 : i32
    %c0_i32_1 = arith.constant 0 : i32
    return %c0_i32, %c0_i32_0 : i32, i32
  }
  func.func @transform_3(%arg0: i32, %arg1: i32) -> (i32, i32, i32) {
    %c0_i32 = arith.constant 0 : i32
    %c0_i32_0 = arith.constant 0 : i32
    return %arg0, %c0_i32, %arg1 : i32, i32, i32
  }
}

</mosaic_0001>

<bundles_post_ra>
// kernel: bbox_head_forward.1
= control target key start
LH: loop header
LB: loop body
LE: loop exit
PB: predicated region body
PF: predicated region fallthrough
CT: control target
= control target key end

     0   :  { %s500_s12 = smov 0   ;;  %s502_s13 = smov 0   ;;  %s547_s0 = inlined_call_operand.vmem [shape: f32[2,32,64], index: 0, kind: input, shape index: {}]   ;;  %s548_s1 = inlined_call_operand.vmem [shape: f32[12,32], index: 1, kind: input, shape index: {}]   ;;  %s549_s2 = inlined_call_operand.vmem [shape: f32[12,1], index: 2, kind: input, shape index: {}]   ;;  %s550_s3 = inlined_call_operand.vmem [shape: f32[2,12,64], index: 3, kind: output, shape index: {}]  }
   0x1   :  { %s504_s14 = smov 0  }
   0x2 LB: > { %s25_s15 = sadd.s32 1, %s473_s13  ;;  %p393_p0 = scmp.ge.s32.totalorder %s477_s14, 1  ;;  %s477_s14 = sphi %s504_s14, %s13_s14   ;;  %s473_s13 = sphi %s502_s13, %s552_s13   ;;  %s469_s12 = sphi %s500_s12, %s551_s12  }
   0x3   : > { %p27_p1 = scmp.ge.s32.totalorder %s25_s15, 2  ;;  %p156_p2 = scmp.lt.s32.totalorder %s477_s14, 3 }
   0x5   : > { %s554_s15 = smov (%p27_p1, %s25_s15), 0  ;;  %p157_p3 = pnand %p393_p0, %p156_p2 }
   0x6   : > { %p186_p4 = scmp.lt.s32.totalorder (!%p157_p3), %s469_s12, 1  ;;  %v202_v0 = vld [vmem:[%s548_s1] sm:$0xff] (!%p157_p3)  ;;  %vm220_vm0 = vcmask (!%p157_p3), 261120   ;;  %v479_v1 = vmov (!%p157_p3), 0   ;;  %v209_v3 = vld [vmem:[%s549_s2 + $0x8] sm:$0xf] (!%p157_p3) }
   0x7   : > { %160 = sbr.rel (%p157_p3) target bundleno = 244 (0xf4), region = 32  ;;  %418 = vmatprep.mubr.msk.f32.mxu0 (!%p157_p3), %vm220_vm0, %v202_v0  ;;  %454 = vset.pattern.permute.xlu0 (!%p157_p3), %v479_v1  ;;  %v208_v2 = vld [vmem:[%s549_s2] sm:$0xff] (!%p157_p3)  ;;  %v203_v10 = vld [vmem:[%s548_s1 + $0x8] sm:$0xf] (!%p157_p3)  ;;  %vm304_vm1 = vcmask (!%p157_p3), 519168   ;;  %vm302_vm2 = vcmask (!%p157_p3), 523264  }
   0x8   : > { %212 = vperm.xlu0 (!%p157_p3), %454, %v208_v2  }
   0xc   : > { %217 = vperm.xlu0 (!%p157_p3), %454, %v209_v3  }
   0xe   : > { %s556_s12 = smov (!%p186_p4, %s469_s12), 1 }
   0xf   : > { %s402_s22 = sshll.u32 %s556_s12, 5  ;;  %s403_s28 = sshll.u32 %s556_s12, 4 }
  0x10   : > { %s193_s25 = scalar_lea.vmem %s547_s0, %s402_s22  ;;  %s201_s4 = scalar_lea.vmem %s550_s3, %s403_s28 }
  0x11   : > { %v204_v4 = vld [vmem:[%s193_s25] sm:$0xff]  ;;  %v205_v5 = vld [vmem:[%s193_s25 + $0x8] sm:$0xff]  ;;  %v206_v6 = vld [vmem:[%s193_s25 + $0x10] sm:$0xff] }
  0x12   : > { %v421_v7 = vpack.c.bf16 %v205_v5, %v204_v4  ;;  %v207_v8 = vld [vmem:[%s193_s25 + $0x18] sm:$0xff] }
  0x13   : > { %v425_v9 = vpack.c.bf16 %v207_v8, %v206_v6 }
  0x14   : > { %422 = vmatprep.subr.bf16.mxu0 %v421_v7 }
  0x15   : > { %424 = vmatpush3.bf16.msra.mxu0 %v421_v7 }
  0x16   : > { %426 = vmatprep.subr.bf16.mxu0 %v425_v9 }
  0x19   : > { %428 = vmatpush3.bf16.msra.mxu0 %v425_v9 }
  0x1c   : > { %419 = vmatmul.mubr.msk.f32.vlgmr.msra.gmra.mrb[0].mxu0 %vm220_vm0, %v203_v10 }
  0x87   : > { %v213_v11 = vpop.permute.xlu0 %212 }
  0x8b   : > { %v218_v12 = vpop.permute.xlu0 %217 }
  0xef   : > { %v420_v13 = vpop.f32.mrb[0].mxu0 }
  0xf0   : > { %v299_v14 = vadd.f32 %v420_v13, %v218_v12  ;;  %v293_v15 = vpop.f32.mrb[1].mxu0 }
  0xf1   : > { %v294_v16 = vadd.f32 %v293_v15, %v213_v11 }
  0xf2   : > { %305 = vst.msk [vmem:[%s201_s4 + $0x8] sm:$0xf] %vm304_vm1, %v299_v14 }
  0xf3   : > { %303 = vst.msk [vmem:[%s201_s4] sm:$0xff] %vm302_vm2, %v294_v16 }
  0xf4 PF: > { %s13_s14 = sadd.s32 1, %s477_s14   ;;  %s551_s12 = smov %s473_s13 }
  0xf5   : > { %p10_p5 = scmp.ge.s32.totalorder %s13_s14, 4   ;;  %s552_s13 = smov %s554_s15 }
  0xf7   :  { %12 = sbr.rel (!%p10_p5) target bundleno = 2 (0x2), region = 62 }

</bundles_post_ra>
